<compile_context>
chip_gen: v7x
topology: tpu7x:2x2x1
jax: 0.10.0
libtpu: 0.0.40
codegen_flags: <defaults>
</compile_context>

<pallas_src>
import jax
import jax.numpy as jnp
from jax.experimental import pallas as pl
from jax.experimental.pallas import tpu as pltpu


def _round_up(x, m):
    return (x + m - 1) // m * m


def _pick_tiles(n):
    """Pick (n_pad, tm, tk): padded node count, row tile, source (K) tile."""
    n_pad = _round_up(n, 128)
    # K tile (source axis): cap at 2048 so the (tm, tk) A block stays small
    # even for huge graphs (bounds VMEM, fits v7x's 64 MiB).
    if n_pad <= 2048:
        tk = n_pad
    else:
        tk = 2048
        n_pad = _round_up(n, tk)
    # Row tile (target axis): up to 512, but keep >= 2 row tiles whenever
    # possible so the "parallel" grid axis can shard across both v7x TCs.
    if n_pad <= 128:
        tm = n_pad
    else:
        tm = 128
        for cand in (512, 256, 128):
            if n_pad % cand == 0 and n_pad // cand >= 2:
                tm = cand
                break
    return n_pad, tm, tk


def build_dense_graph(edge_index, edge_weight, n_pad):
    """Dense raw adjacency (bf16) + inverse weighted in-degree (f32, [Np,1]).

    Hoisted out of the per-layer path so one graph build can be reused across
    both GraphConv layers, all LSTM gates and all timesteps.
    """
    src, tgt = edge_index[0], edge_index[1]
    # A[i, j] = sum of weights of edges j -> i (duplicate edges are summed).
    adj = jnp.zeros((n_pad, n_pad), jnp.float32).at[tgt, src].add(edge_weight)
    deg = adj.sum(axis=1, keepdims=True)                     # weighted in-degree
    # deg <= 0 rows (isolated / padded nodes) aggregate to zero -> output = bias,
    # matching tsl GraphConv 'mean' behaviour.
    inv_deg = jnp.where(deg > 0, 1.0 / jnp.where(deg > 0, deg, 1.0), 0.0)
    return adj.astype(jnp.bfloat16), inv_deg


def _aggregate_kernel(a_ref, y_ref, b_ref, inv_deg_ref, o_ref, acc_ref):
    """Mean-normalized graph aggregation for one (row-tile, K-tile) grid step.

    a_ref       [tm, tk]  bf16  raw adjacency tile (targets x sources)
    y_ref       [tk, Hp]  bf16  transformed source features (x @ W), K-tile
    b_ref       [1,  Hp]  f32   bias (zero-padded to lane-dense Hp)
    inv_deg_ref [tm, 1]   f32   1 / weighted in-degree (0 where deg <= 0)
    o_ref       [tm, Hp]        output rows (f32 or bf16), lane-dense Hp
    acc_ref     [tm, Hp]  f32   VMEM accumulator over the source (K) axis
    """
    k = pl.program_id(1)

    @pl.when(k == 0)
    def _():
        acc_ref[...] = jnp.zeros_like(acc_ref)

    # bf16 x bf16 on the MXU, f32 accumulation.
    acc_ref[...] += jnp.dot(a_ref[...], y_ref[...],
                            preferred_element_type=jnp.float32)

    @pl.when(k == pl.num_programs(1) - 1)
    def _():
        # 'mean' normalization folded in: diag(1/deg) @ A @ y == inv_deg * (A @ y).
        o_ref[...] = (inv_deg_ref[...] * acc_ref[...]
                      + b_ref[...]).astype(o_ref.dtype)


def _graph_conv_layer(adj_bf16, inv_deg, h, w_pad, b_pad, *, tm, tk, out_dtype):
    """One GraphConv layer: hoisted XLA transform + Pallas tiled aggregation."""
    n_pad = adj_bf16.shape[0]
    h_pad = w_pad.shape[1]

    # Hoisted feature transform (tiny [Np,F]@[F,Hp] matmul, f32 accuracy),
    # cast once to bf16 as the MXU aggregation operand.
    y = jnp.dot(h.astype(jnp.float32), w_pad, preferred_element_type=jnp.float32)
    y_bf16 = y.astype(jnp.bfloat16)

    grid = (n_pad // tm, n_pad // tk)
    return pl.pallas_call(
        _aggregate_kernel,
        out_shape=jax.ShapeDtypeStruct((n_pad, h_pad), out_dtype),
        grid_spec=pltpu.PrefetchScalarGridSpec(
            num_scalar_prefetch=0,
            grid=grid,
            in_specs=[
                pl.BlockSpec((tm, tk), lambda i, k: (i, k)),     # A tile
                pl.BlockSpec((tk, h_pad), lambda i, k: (k, 0)),  # y source K-tile
                pl.BlockSpec((1, h_pad), lambda i, k: (0, 0)),   # bias
                pl.BlockSpec((tm, 1), lambda i, k: (i, 0)),      # inv_deg row tile
            ],
            out_specs=pl.BlockSpec((tm, h_pad), lambda i, k: (i, 0)),
            scratch_shapes=[pltpu.VMEM((tm, h_pad), jnp.float32)],
        ),
        compiler_params=pltpu.CompilerParams(
            dimension_semantics=("parallel", "arbitrary"),  # rows parallel, K reduce
            # K-tiling bounds actual use well below this on every chip; 48 MiB is
            # above the 16/32 MiB scoped defaults and below v7x's 64 MiB physical.
            vmem_limit_bytes=48 * 1024 * 1024,
        ),
    )(adj_bf16, y_bf16, b_pad, inv_deg)


def gclstm_conv(x, edge_index, edge_weight, w1, b1, w2, b2):
    """Forward pass of GCLSTMConv (k=2 GraphConv layers, 'mean' norm)."""
    n, f_in = x.shape
    hidden = w1.shape[1]

    n_pad, tm, tk = _pick_tiles(n)
    # Lane-dense hidden padding; 256-aligned when hidden > 128 to match the
    # v6e/v7x 2x256 MXU output width (128 already matches v5e's 4x128 MXU).
    h_pad = _round_up(hidden, 128) if hidden <= 128 else _round_up(hidden, 256)

    # Dense graph: reusable across layers / gates / timesteps by callers that
    # hoist it; kept inside here only to preserve the module's signature.
    adj_bf16, inv_deg = build_dense_graph(edge_index, edge_weight, n_pad)

    # Zero-pad features and parameters to padded node count / lane-dense hidden.
    x_p = jnp.zeros((n_pad, f_in), jnp.float32).at[:n].set(x.astype(jnp.float32))
    w1_p = jnp.zeros((f_in, h_pad), jnp.float32).at[:, :hidden].set(w1)
    b1_p = jnp.zeros((1, h_pad), jnp.float32).at[0, :hidden].set(b1)
    w2_p = jnp.zeros((h_pad, h_pad), jnp.float32).at[:hidden, :hidden].set(w2)
    b2_p = jnp.zeros((1, h_pad), jnp.float32).at[0, :hidden].set(b2)

    # Layer-1 intermediate in bf16 (halves its HBM write/read).  Padded target
    # rows of h1 contain only b1, but their adjacency columns are all zero, so
    # they contribute nothing to layer 2.
    h1 = _graph_conv_layer(adj_bf16, inv_deg, x_p, w1_p, b1_p,
                           tm=tm, tk=tk, out_dtype=jnp.bfloat16)
    h2 = _graph_conv_layer(adj_bf16, inv_deg, h1, w2_p, b2_p,
                           tm=tm, tk=tk, out_dtype=jnp.float32)
    return h2[:n, :hidden]


def reference(x, edge_index, edge_weight, w1, b1, w2, b2):
    """Pure-JAX f32 reference of the same math (matches the PyTorch module)."""
    n = x.shape[0]
    src, tgt = edge_index[0], edge_index[1]
    adj = jnp.zeros((n, n), dtype=jnp.float32).at[tgt, src].add(edge_weight)
    deg = adj.sum(axis=1, keepdims=True)
    a = jnp.where(deg > 0, adj / jnp.where(deg > 0, deg, 1.0), 0.0)
    h = a @ (x @ w1) + b1
    h = a @ (h @ w2) + b2
    return h


if __name__ == "__main__":
    key = jax.random.PRNGKey(0)
    k_x, k_ei, k_ew, k_w1, k_b1, k_w2, k_b2 = jax.random.split(key, 7)

    num_nodes = 16
    input_size = 4
    hidden_size = 32
    num_edges = 48

    x = jax.random.normal(k_x, (num_nodes, input_size), dtype=jnp.float32)
    edge_index = jax.random.randint(k_ei, (2, num_edges), 0, num_nodes,
                                    dtype=jnp.int32)
    edge_weight = jax.random.uniform(k_ew, (num_edges,), dtype=jnp.float32,
                                     minval=0.1, maxval=1.0)

    # GraphConv-shaped parameters (stored transposed w.r.t. torch.nn.Linear):
    # layer 0: Linear(input_size -> hidden), layer 1: Linear(hidden -> hidden).
    w1 = jax.random.normal(k_w1, (input_size, hidden_size), jnp.float32) * 0.2
    b1 = jax.random.normal(k_b1, (hidden_size,), jnp.float32) * 0.05
    w2 = jax.random.normal(k_w2, (hidden_size, hidden_size), jnp.float32) * 0.1
    b2 = jax.random.normal(k_b2, (hidden_size,), jnp.float32) * 0.05

    gclstm_fn = jax.jit(gclstm_conv)
    out = gclstm_fn(x, edge_index, edge_weight, w1, b1, w2, b2)
    out = jax.block_until_ready(out)

    ref = reference(x, edge_index, edge_weight, w1, b1, w2, b2)
    assert out.shape == (num_nodes, hidden_size)
    # Tolerance accounts for the bf16 adjacency / bf16 transformed features on
    # the MXU (f32 accumulation) and the bf16 layer-1 intermediate; kernel math
    # is otherwise identical to the reference.
    assert jnp.allclose(out, ref, atol=2e-2, rtol=2e-2), "mismatch vs reference"

    print("KERNEL_OK")
</pallas_src>

<mosaic_0001>
module attributes {stable_mosaic.version = 11 : i64} {
  func.func private @main(%arg0: i32) attributes {dimension_semantics = [#tpu.dimension_semantics<core_parallel>], iteration_bounds = array<i64: 2>, tpu.core_type = #tpu.core_type<sc_scalar_subcore>, window_params = []} {
    return
  }
}

module attributes {stable_mosaic.version = 11 : i64} {
  func.func private @main(%arg0: i32) attributes {dimension_semantics = [#tpu.dimension_semantics<core_parallel>], iteration_bounds = array<i64: 2>, tpu.core_type = #tpu.core_type<sc_scalar_subcore>, window_params = []} {
    return
  }
}

module attributes {stable_mosaic.version = 11 : i64} {
  func.func @_aggregate_kernel(%arg0: i32, %arg1: i32, %arg2: memref<128x128xbf16, #tpu.memory_space<vmem>>, %arg3: memref<128x128xbf16, #tpu.memory_space<vmem>>, %arg4: memref<1x128xf32, #tpu.memory_space<vmem>>, %arg5: memref<128x1xf32, #tpu.memory_space<vmem>>, %arg6: memref<128x128xbf16, #tpu.memory_space<vmem>>, %arg7: memref<128x128xf32, #tpu.memory_space<vmem>>) attributes {dimension_semantics = [#tpu.dimension_semantics<parallel>, #tpu.dimension_semantics<arbitrary>], iteration_bounds = array<i64: 1, 1>, scalar_prefetch = 0 : i64, scratch_operands = 1 : i64, tpu.core_type = #tpu.core_type<tc>, window_params = [{transform_indices = @transform_0, window_bounds = array<i64: 128, 128>}, {transform_indices = @transform_1, window_bounds = array<i64: 128, 128>}, {pipeline_mode = #tpu.pipeline_mode<synchronous>, transform_indices = @transform_2, window_bounds = array<i64: 1, 128>}, {transform_indices = @transform_3, window_bounds = array<i64: 128, 1>}, {transform_indices = @transform_4, window_bounds = array<i64: 128, 128>}]} {
    %c0_i32 = arith.constant 0 : i32
    %0 = arith.cmpi eq, %arg1, %c0_i32 : i32
    %1 = arith.extui %0 : i1 to i32
    %c0_i32_0 = arith.constant 0 : i32
    %2 = arith.cmpi ne, %1, %c0_i32_0 : i32
    scf.if %2 {
      %cst_10 = arith.constant 0.000000e+00 : f32
      %12 = vector.broadcast %cst_10 : f32 to vector<128x128xf32>
      %c0_11 = arith.constant 0 : index
      %c0_12 = arith.constant 0 : index
      %13 = vector.load %arg7[%c0_11, %c0_12] : memref<128x128xf32, #tpu.memory_space<vmem>>, vector<128x128xf32>
      tpu.vector_store %arg7[%c0_11, %c0_12], %12 {strides = array<i32>} : memref<128x128xf32, #tpu.memory_space<vmem>>, vector<128x128xf32>,
    } else {
    }
    %c0 = arith.constant 0 : index
    %c0_1 = arith.constant 0 : index
    %3 = vector.load %arg7[%c0, %c0_1] : memref<128x128xf32, #tpu.memory_space<vmem>>, vector<128x128xf32>
    %c0_2 = arith.constant 0 : index
    %c0_3 = arith.constant 0 : index
    %4 = vector.load %arg2[%c0_2, %c0_3] : memref<128x128xbf16, #tpu.memory_space<vmem>>, vector<128x128xbf16>
    %c0_4 = arith.constant 0 : index
    %c0_5 = arith.constant 0 : index
    %5 = vector.load %arg3[%c0_4, %c0_5] : memref<128x128xbf16, #tpu.memory_space<vmem>>, vector<128x128xbf16>
    %cst = arith.constant dense<0.000000e+00> : vector<128x128xf32>
    %6 = tpu.matmul %4, %5, %cst {dimension_numbers = #tpu.dot_dimension_numbers<[1], [0], [0], [1], [0, 0, 1, 1], [], []>} : vector<128x128xbf16>, vector<128x128xbf16>, vector<128x128xf32> -> vector<128x128xf32>
    %7 = arith.addf %3, %6 : vector<128x128xf32>
    %c0_6 = arith.constant 0 : index
    %c0_7 = arith.constant 0 : index
    %8 = vector.load %arg7[%c0_6, %c0_7] : memref<128x128xf32, #tpu.memory_space<vmem>>, vector<128x128xf32>
    tpu.vector_store %arg7[%c0_6, %c0_7], %7 {strides = array<i32>} : memref<128x128xf32, #tpu.memory_space<vmem>>, vector<128x128xf32>,
    %c0_i32_8 = arith.constant 0 : i32
    %9 = arith.cmpi eq, %arg1, %c0_i32_8 : i32
    %10 = arith.extui %9 : i1 to i32
    %c0_i32_9 = arith.constant 0 : i32
    %11 = arith.cmpi ne, %10, %c0_i32_9 : i32
    scf.if %11 {
      %c0_10 = arith.constant 0 : index
      %c0_11 = arith.constant 0 : index
      %12 = vector.load %arg5[%c0_10, %c0_11] : memref<128x1xf32, #tpu.memory_space<vmem>>, vector<128x1xf32>
      %c0_12 = arith.constant 0 : index
      %c0_13 = arith.constant 0 : index
      %13 = vector.load %arg7[%c0_12, %c0_13] : memref<128x128xf32, #tpu.memory_space<vmem>>, vector<128x128xf32>
      %14 = vector.broadcast %12 : vector<128x1xf32> to vector<128x128xf32>
      %15 = arith.mulf %14, %13 : vector<128x128xf32>
      %c0_14 = arith.constant 0 : index
      %c0_15 = arith.constant 0 : index
      %16 = vector.load %arg4[%c0_14, %c0_15] : memref<1x128xf32, #tpu.memory_space<vmem>>, vector<1x128xf32>
      %17 = vector.broadcast %16 : vector<1x128xf32> to vector<128x128xf32>
      %18 = arith.addf %15, %17 : vector<128x128xf32>
      %19 = arith.truncf %18 : vector<128x128xf32> to vector<128x128xbf16>
      %c0_16 = arith.constant 0 : index
      %c0_17 = arith.constant 0 : index
      %20 = vector.load %arg6[%c0_16, %c0_17] : memref<128x128xbf16, #tpu.memory_space<vmem>>, vector<128x128xbf16>
      tpu.vector_store %arg6[%c0_16, %c0_17], %19 {strides = array<i32>} : memref<128x128xbf16, #tpu.memory_space<vmem>>, vector<128x128xbf16>,
    } else {
    }
    return
  }
  func.func @transform_0(%arg0: i32, %arg1: i32) -> (i32, i32) {
    %c0_i32 = arith.constant 0 : i32
    return %arg0, %arg1 : i32, i32
  }
  func.func @transform_1(%arg0: i32, %arg1: i32) -> (i32, i32) {
    %c0_i32 = arith.constant 0 : i32
    %c0_i32_0 = arith.constant 0 : i32
    return %arg1, %c0_i32 : i32, i32
  }
  func.func @transform_2(%arg0: i32, %arg1: i32) -> (i32, i32) {
    %c0_i32 = arith.constant 0 : i32
    %c0_i32_0 = arith.constant 0 : i32
    %c0_i32_1 = arith.constant 0 : i32
    return %c0_i32, %c0_i32_0 : i32, i32
  }
  func.func @transform_3(%arg0: i32, %arg1: i32) -> (i32, i32) {
    %c0_i32 = arith.constant 0 : i32
    %c0_i32_0 = arith.constant 0 : i32
    return %arg0, %c0_i32 : i32, i32
  }
  func.func @transform_4(%arg0: i32, %arg1: i32) -> (i32, i32) {
    %c0_i32 = arith.constant 0 : i32
    %c0_i32_0 = arith.constant 0 : i32
    return %arg0, %c0_i32 : i32, i32
  }
}

module attributes {stable_mosaic.version = 11 : i64} {
  func.func @_aggregate_kernel(%arg0: i32, %arg1: i32, %arg2: memref<128x128xbf16, #tpu.memory_space<vmem>>, %arg3: memref<128x128xbf16, #tpu.memory_space<vmem>>, %arg4: memref<1x128xf32, #tpu.memory_space<vmem>>, %arg5: memref<128x1xf32, #tpu.memory_space<vmem>>, %arg6: memref<128x128xf32, #tpu.memory_space<vmem>>, %arg7: memref<128x128xf32, #tpu.memory_space<vmem>>) attributes {dimension_semantics = [#tpu.dimension_semantics<parallel>, #tpu.dimension_semantics<arbitrary>], iteration_bounds = array<i64: 1, 1>, scalar_prefetch = 0 : i64, scratch_operands = 1 : i64, tpu.core_type = #tpu.core_type<tc>, window_params = [{transform_indices = @transform_0, window_bounds = array<i64: 128, 128>}, {transform_indices = @transform_1, window_bounds = array<i64: 128, 128>}, {pipeline_mode = #tpu.pipeline_mode<synchronous>, transform_indices = @transform_2, window_bounds = array<i64: 1, 128>}, {transform_indices = @transform_3, window_bounds = array<i64: 128, 1>}, {transform_indices = @transform_4, window_bounds = array<i64: 128, 128>}]} {
    %c0_i32 = arith.constant 0 : i32
    %0 = arith.cmpi eq, %arg1, %c0_i32 : i32
    %1 = arith.extui %0 : i1 to i32
    %c0_i32_0 = arith.constant 0 : i32
    %2 = arith.cmpi ne, %1, %c0_i32_0 : i32
    scf.if %2 {
      %cst_10 = arith.constant 0.000000e+00 : f32
      %12 = vector.broadcast %cst_10 : f32 to vector<128x128xf32>
      %c0_11 = arith.constant 0 : index
      %c0_12 = arith.constant 0 : index
      %13 = vector.load %arg7[%c0_11, %c0_12] : memref<128x128xf32, #tpu.memory_space<vmem>>, vector<128x128xf32>
      tpu.vector_store %arg7[%c0_11, %c0_12], %12 {strides = array<i32>} : memref<128x128xf32, #tpu.memory_space<vmem>>, vector<128x128xf32>,
    } else {
    }
    %c0 = arith.constant 0 : index
    %c0_1 = arith.constant 0 : index
    %3 = vector.load %arg7[%c0, %c0_1] : memref<128x128xf32, #tpu.memory_space<vmem>>, vector<128x128xf32>
    %c0_2 = arith.constant 0 : index
    %c0_3 = arith.constant 0 : index
    %4 = vector.load %arg2[%c0_2, %c0_3] : memref<128x128xbf16, #tpu.memory_space<vmem>>, vector<128x128xbf16>
    %c0_4 = arith.constant 0 : index
    %c0_5 = arith.constant 0 : index
    %5 = vector.load %arg3[%c0_4, %c0_5] : memref<128x128xbf16, #tpu.memory_space<vmem>>, vector<128x128xbf16>
    %cst = arith.constant dense<0.000000e+00> : vector<128x128xf32>
    %6 = tpu.matmul %4, %5, %cst {dimension_numbers = #tpu.dot_dimension_numbers<[1], [0], [0], [1], [0, 0, 1, 1], [], []>} : vector<128x128xbf16>, vector<128x128xbf16>, vector<128x128xf32> -> vector<128x128xf32>
    %7 = arith.addf %3, %6 : vector<128x128xf32>
    %c0_6 = arith.constant 0 : index
    %c0_7 = arith.constant 0 : index
    %8 = vector.load %arg7[%c0_6, %c0_7] : memref<128x128xf32, #tpu.memory_space<vmem>>, vector<128x128xf32>
    tpu.vector_store %arg7[%c0_6, %c0_7], %7 {strides = array<i32>} : memref<128x128xf32, #tpu.memory_space<vmem>>, vector<128x128xf32>,
    %c0_i32_8 = arith.constant 0 : i32
    %9 = arith.cmpi eq, %arg1, %c0_i32_8 : i32
    %10 = arith.extui %9 : i1 to i32
    %c0_i32_9 = arith.constant 0 : i32
    %11 = arith.cmpi ne, %10, %c0_i32_9 : i32
    scf.if %11 {
      %c0_10 = arith.constant 0 : index
      %c0_11 = arith.constant 0 : index
      %12 = vector.load %arg5[%c0_10, %c0_11] : memref<128x1xf32, #tpu.memory_space<vmem>>, vector<128x1xf32>
      %c0_12 = arith.constant 0 : index
      %c0_13 = arith.constant 0 : index
      %13 = vector.load %arg7[%c0_12, %c0_13] : memref<128x128xf32, #tpu.memory_space<vmem>>, vector<128x128xf32>
      %14 = vector.broadcast %12 : vector<128x1xf32> to vector<128x128xf32>
      %15 = arith.mulf %14, %13 : vector<128x128xf32>
      %c0_14 = arith.constant 0 : index
      %c0_15 = arith.constant 0 : index
      %16 = vector.load %arg4[%c0_14, %c0_15] : memref<1x128xf32, #tpu.memory_space<vmem>>, vector<1x128xf32>
      %17 = vector.broadcast %16 : vector<1x128xf32> to vector<128x128xf32>
      %18 = arith.addf %15, %17 : vector<128x128xf32>
      %c0_16 = arith.constant 0 : index
      %c0_17 = arith.constant 0 : index
      %19 = vector.load %arg6[%c0_16, %c0_17] : memref<128x128xf32, #tpu.memory_space<vmem>>, vector<128x128xf32>
      tpu.vector_store %arg6[%c0_16, %c0_17], %18 {strides = array<i32>} : memref<128x128xf32, #tpu.memory_space<vmem>>, vector<128x128xf32>,
    } else {
    }
    return
  }
  func.func @transform_0(%arg0: i32, %arg1: i32) -> (i32, i32) {
    %c0_i32 = arith.constant 0 : i32
    return %arg0, %arg1 : i32, i32
  }
  func.func @transform_1(%arg0: i32, %arg1: i32) -> (i32, i32) {
    %c0_i32 = arith.constant 0 : i32
    %c0_i32_0 = arith.constant 0 : i32
    return %arg1, %c0_i32 : i32, i32
  }
  func.func @transform_2(%arg0: i32, %arg1: i32) -> (i32, i32) {
    %c0_i32 = arith.constant 0 : i32
    %c0_i32_0 = arith.constant 0 : i32
    %c0_i32_1 = arith.constant 0 : i32
    return %c0_i32, %c0_i32_0 : i32, i32
  }
  func.func @transform_3(%arg0: i32, %arg1: i32) -> (i32, i32) {
    %c0_i32 = arith.constant 0 : i32
    %c0_i32_0 = arith.constant 0 : i32
    return %arg0, %c0_i32 : i32, i32
  }
  func.func @transform_4(%arg0: i32, %arg1: i32) -> (i32, i32) {
    %c0_i32 = arith.constant 0 : i32
    %c0_i32_0 = arith.constant 0 : i32
    return %arg0, %c0_i32 : i32, i32
  }
}

</mosaic_0001>

<bundles_post_ra>
// kernel: gclstm_conv.2
= control target key start
LH: loop header
LB: loop body
LE: loop exit
PB: predicated region body
PF: predicated region fallthrough
CT: control target
= control target key end

     0   :  { %v585_v1 = vmov 0   ;;  %s734_s1 = inlined_call_operand.vmem [shape: bf16[128,128], index: 1, kind: input, shape index: {}]   ;;  %s735_s0 = inlined_call_operand.vmem [shape: bf16[128,128], index: 0, kind: input, shape index: {}]   ;;  %s736_s3 = inlined_call_operand.vmem [shape: f32[128,1], index: 3, kind: input, shape index: {}]   ;;  %s737_s2 = inlined_call_operand.vmem [shape: f32[1,128], index: 2, kind: input, shape index: {}]   ;;  %s738_s4 = inlined_call_operand.vmem [shape: bf16[128,128], index: 4, kind: output, shape index: {}]  }
   0x1   :  { %v569_v0 = vld [vmem:[%s734_s1] sm:$0xff]   ;;  %568 = vset.pattern.permute.xlu1 %v585_v1  ;;  %567 = vset.pattern.permute.xlu0 %v585_v1  ;;  %v570_v2 = vld [vmem:[%s734_s1 + $0x8] sm:$0xff]   ;;  %v571_v3 = vld [vmem:[%s734_s1 + $0x10] sm:$0xff]  }
   0x2   :  { %518 = vmatprep.subr.bf16.mxu0 %v569_v0  ;;  %550 = vmatprep.subr.bf16.mxu1 %v569_v0  ;;  %v572_v4 = vld [vmem:[%s734_s1 + $0x18] sm:$0xff]   ;;  %v577_v5 = vld [vmem:[%s735_s0] sm:$0xff]   ;;  %v574_v8 = vld [vmem:[%s734_s1 + $0x28] sm:$0xff]  }
   0x3   :  { %519 = vmatpush3.bf16.msra.mxu0 %v569_v0  ;;  %558 = vmatpush3.bf16.msra.mxu1 %v569_v0  ;;  %v578_v6 = vld [vmem:[%s735_s0 + $0x20] sm:$0xff]   ;;  %v316_v9 = vld [vmem:[%s736_s3 + $0x10] sm:$0xff]  ;;  %v317_v11 = vld [vmem:[%s736_s3 + $0x18] sm:$0xff] }
   0x4   :  { %520 = vmatprep.subr.bf16.mxu0 %v570_v2  ;;  %551 = vmatprep.subr.bf16.mxu1 %v570_v2  ;;  %v573_v7 = vld [vmem:[%s734_s1 + $0x20] sm:$0xff]   ;;  %v315_v12 = vld [vmem:[%s736_s3 + $0x8] sm:$0xff]  ;;  %v575_v13 = vld [vmem:[%s734_s1 + $0x30] sm:$0xff]  }
   0x5   :  { %534 = vmatprep.mubr.bf16.mxu0 %v577_v5  ;;  %542 = vmatprep.mubr.bf16.mxu1 %v578_v6  ;;  %v314_v10 = vld [vmem:[%s736_s3] sm:$0xff]  ;;  %v319_v14 = vld [vmem:[%s736_s3 + $0x28] sm:$0xff]  ;;  %v576_v16 = vld [vmem:[%s734_s1 + $0x38] sm:$0xff]  }
   0x6   :  { %358 = vperm.xlu1 %568, %v316_v9   ;;  %348 = vperm.xlu0 %567, %v314_v10   ;;  %v318_v15 = vld [vmem:[%s736_s3 + $0x20] sm:$0xff]  ;;  %v321_v17 = vld [vmem:[%s736_s3 + $0x38] sm:$0xff]  ;;  %v320_v18 = vld [vmem:[%s736_s3 + $0x30] sm:$0xff] }
   0x7   :  { %521 = vmatpush3.bf16.msra.mxu0 %v570_v2  ;;  %559 = vmatpush3.bf16.msra.mxu1 %v570_v2  ;;  %v579_v19 = vld [vmem:[%s735_s0 + $0x8] sm:$0xff]   ;;  %v322_v22 = vld [vmem:[%s736_s3 + $0x40] sm:$0xff]  ;;  %v581_v23 = vld [vmem:[%s735_s0 + $0x10] sm:$0xff]  }
   0x8   :  { %522 = vmatprep.subr.bf16.mxu0 %v571_v3  ;;  %552 = vmatprep.subr.bf16.mxu1 %v571_v3  ;;  %v580_v20 = vld [vmem:[%s735_s0 + $0x28] sm:$0xff]   ;;  %v582_v24 = vld [vmem:[%s735_s0 + $0x30] sm:$0xff]   ;;  %v325_v25 = vld [vmem:[%s736_s3 + $0x58] sm:$0xff] }
   0x9   :  { %v323_v21 = vld [vmem:[%s736_s3 + $0x48] sm:$0xff]  ;;  %v324_v26 = vld [vmem:[%s736_s3 + $0x50] sm:$0xff]  ;;  %v583_v27 = vld [vmem:[%s735_s0 + $0x18] sm:$0xff]  }
   0xa   :  { %363 = vperm.xlu1 %568, %v317_v11   ;;  %353 = vperm.xlu0 %567, %v315_v12   ;;  %v584_v28 = vld [vmem:[%s735_s0 + $0x38] sm:$0xff]   ;;  %v327_v29 = vld [vmem:[%s736_s3 + $0x68] sm:$0xff]  ;;  %v326_v30 = vld [vmem:[%s736_s3 + $0x60] sm:$0xff] }
   0xb   :  { %523 = vmatpush3.bf16.msra.mxu0 %v571_v3  ;;  %560 = vmatpush3.bf16.msra.mxu1 %v571_v3  ;;  %v329_v31 = vld [vmem:[%s736_s3 + $0x78] sm:$0xff]  ;;  %v328_v32 = vld [vmem:[%s736_s3 + $0x70] sm:$0xff]  ;;  %v501_v53 = vld [vmem:[%s737_s2] ss:$0 sm:$0xff] }
   0xc   :  { %524 = vmatprep.subr.bf16.mxu0 %v572_v4  ;;  %553 = vmatprep.subr.bf16.mxu1 %v572_v4 }
   0xe   :  { %373 = vperm.xlu1 %568, %v319_v14   ;;  %368 = vperm.xlu0 %567, %v318_v15  }
   0xf   :  { %525 = vmatpush3.bf16.msra.mxu0 %v572_v4  ;;  %561 = vmatpush3.bf16.msra.mxu1 %v572_v4 }
  0x10   :  { %526 = vmatprep.subr.bf16.mxu0 %v573_v7  ;;  %554 = vmatprep.subr.bf16.mxu1 %v573_v7 }
  0x12   :  { %383 = vperm.xlu1 %568, %v321_v17   ;;  %378 = vperm.xlu0 %567, %v320_v18  }
  0x13   :  { %527 = vmatpush3.bf16.msra.mxu0 %v573_v7  ;;  %562 = vmatpush3.bf16.msra.mxu1 %v573_v7 }
  0x14   :  { %528 = vmatprep.subr.bf16.mxu0 %v574_v8  ;;  %555 = vmatprep.subr.bf16.mxu1 %v574_v8 }
  0x16   :  { %393 = vperm.xlu1 %568, %v323_v21   ;;  %388 = vperm.xlu0 %567, %v322_v22  }
  0x17   :  { %529 = vmatpush3.bf16.msra.mxu0 %v574_v8  ;;  %563 = vmatpush3.bf16.msra.mxu1 %v574_v8 }
  0x18   :  { %530 = vmatprep.subr.bf16.mxu0 %v575_v13  ;;  %556 = vmatprep.subr.bf16.mxu1 %v575_v13 }
  0x1a   :  { %403 = vperm.xlu1 %568, %v325_v25   ;;  %398 = vperm.xlu0 %567, %v324_v26  }
  0x1b   :  { %531 = vmatpush3.bf16.msra.mxu0 %v575_v13  ;;  %564 = vmatpush3.bf16.msra.mxu1 %v575_v13 }
  0x1c   :  { %532 = vmatprep.subr.bf16.mxu0 %v576_v16  ;;  %557 = vmatprep.subr.bf16.mxu1 %v576_v16 }
  0x1e   :  { %413 = vperm.xlu1 %568, %v327_v29   ;;  %408 = vperm.xlu0 %567, %v326_v30  }
  0x1f   :  { %533 = vmatpush3.bf16.msra.mxu0 %v576_v16  ;;  %565 = vmatpush3.bf16.msra.mxu1 %v576_v16 }
  0x22   :  { %535 = vmatmul.mubr.bf16.vlgmr.msra.gmra.mrb[0].mxu0 %v579_v19  ;;  %543 = vmatmul.mubr.bf16.vlgmr.msra.gmra.mrb[0].mxu1 %v580_v20 }
  0x23   :  { %538 = vmatprep.mubr.bf16.mxu0 %v581_v23  ;;  %546 = vmatprep.mubr.bf16.mxu1 %v582_v24 }
  0x24   :  { %423 = vperm.xlu1 %568, %v329_v31   ;;  %418 = vperm.xlu0 %567, %v328_v32  }
  0x2a   :  { %539 = vmatmul.mubr.bf16.gmra.mrb[4].mxu0 %v583_v27  ;;  %547 = vmatmul.mubr.bf16.gmra.mrb[4].mxu1 %v584_v28 }
  0x85   :  { %v359_v33 = vpop.permute.xlu1 %358  ;;  %v349_v34 = vpop.permute.xlu0 %348 }
  0x89   :  { %v364_v35 = vpop.permute.xlu1 %363  ;;  %v354_v36 = vpop.permute.xlu0 %353 }
  0x8d   :  { %v374_v37 = vpop.permute.xlu1 %373  ;;  %v369_v38 = vpop.permute.xlu0 %368 }
  0x91   :  { %v384_v39 = vpop.permute.xlu1 %383  ;;  %v379_v40 = vpop.permute.xlu0 %378 }
  0x95   :  { %v394_v41 = vpop.permute.xlu1 %393  ;;  %v389_v42 = vpop.permute.xlu0 %388 }
  0x99   :  { %v404_v43 = vpop.permute.xlu1 %403  ;;  %v399_v44 = vpop.permute.xlu0 %398 }
  0x9d   :  { %v414_v45 = vpop.permute.xlu1 %413  ;;  %v409_v46 = vpop.permute.xlu0 %408 }
  0xa3   :  { %v424_v8 = vpop.permute.xlu1 %423  ;;  %v419_v9 = vpop.permute.xlu0 %418 }
  0xf5   :  { %v536_v47 = vpop.f32.mrb[0].mxu0  ;;  %v544_v48 = vpop.f32.mrb[0].mxu1 }
  0xf6   :  { %v428_v49 = vmul.f32 %v536_v47, %v359_v33  ;;  %v436_v50 = vmul.f32 %v544_v48, %v399_v44  ;;  %v216_v51 = vpop.f32.mrb[1].mxu0  ;;  %v248_v52 = vpop.f32.mrb[1].mxu1 }
  0xf7   :  { %v426_v54 = vmul.f32 %v349_v34, %v216_v51  ;;  %v434_v55 = vmul.f32 %v389_v42, %v248_v52  ;;  %v537_v56 = vpop.f32.mrb[2].mxu0  ;;  %v545_v57 = vpop.f32.mrb[2].mxu1 }
  0xf8   :  { %v429_v58 = vmul.f32 %v537_v56, %v364_v35  ;;  %v437_v59 = vmul.f32 %v545_v57, %v404_v43  ;;  %v219_v60 = vpop.f32.mrb[3].mxu0  ;;  %v251_v61 = vpop.f32.mrb[3].mxu1  ;;  %v451_v0 = vadd.f32 %v501_v53, %v428_v49  ;;  %v459_v1 = vadd.f32 %v501_v53, %v436_v50 }
  0xf9   :  { %v427_v62 = vmul.f32 %v354_v36, %v219_v60  ;;  %v435_v63 = vmul.f32 %v394_v41, %v251_v61  ;;  %v449_v4 = vadd.f32 %v501_v53, %v426_v54  ;;  %v457_v5 = vadd.f32 %v501_v53, %v434_v55 }
  0xfa   :  { %v452_v2 = vadd.f32 %v501_v53, %v429_v58  ;;  %v460_v3 = vadd.f32 %v501_v53, %v437_v59 }
  0xfb   :  { %v450_v6 = vadd.f32 %v501_v53, %v427_v62  ;;  %v458_v7 = vadd.f32 %v501_v53, %v435_v63 }
  0xfc   :  { %v466_v10 = vpack.c.bf16 %v452_v2, %v451_v0  ;;  %v470_v11 = vpack.c.bf16 %v460_v3, %v459_v1 }
  0xfd   :  { %v465_v12 = vpack.c.bf16 %v450_v6, %v449_v4  ;;  %v469_v13 = vpack.c.bf16 %v458_v7, %v457_v5  ;;  %v540_v14 = vpop.f32.mrb[4].mxu0  ;;  %v548_v15 = vpop.f32.mrb[4].mxu1 }
  0xfe   :  { %474 = vst [vmem:[%s738_s4 + $0x8] sm:$0xff] %v466_v10  ;;  %478 = vst [vmem:[%s738_s4 + $0x28] sm:$0xff] %v470_v11  ;;  %v432_v16 = vmul.f32 %v540_v14, %v379_v40  ;;  %v440_v17 = vmul.f32 %v548_v15, %v419_v9  ;;  %v232_v18 = vpop.f32.mrb[5].mxu0  ;;  %v264_v19 = vpop.f32.mrb[5].mxu1 }
  0xff   :  { %473 = vst [vmem:[%s738_s4] sm:$0xff] %v465_v12  ;;  %477 = vst [vmem:[%s738_s4 + $0x20] sm:$0xff] %v469_v13  ;;  %v430_v20 = vmul.f32 %v369_v38, %v232_v18  ;;  %v438_v21 = vmul.f32 %v409_v46, %v264_v19  ;;  %v541_v22 = vpop.f32.mrb[6].mxu0  ;;  %v549_v23 = vpop.f32.mrb[6].mxu1 }
 0x100   :  { %v433_v24 = vmul.f32 %v541_v22, %v384_v39  ;;  %v441_v25 = vmul.f32 %v549_v23, %v424_v8  ;;  %v235_v26 = vpop.f32.mrb[7].mxu0  ;;  %v267_v27 = vpop.f32.mrb[7].mxu1  ;;  %v455_v30 = vadd.f32 %v501_v53, %v432_v16  ;;  %v463_v31 = vadd.f32 %v501_v53, %v440_v17 }
 0x101   :  { %v431_v28 = vmul.f32 %v374_v37, %v235_v26  ;;  %v439_v29 = vmul.f32 %v414_v45, %v267_v27  ;;  %v453_v34 = vadd.f32 %v501_v53, %v430_v20  ;;  %v461_v35 = vadd.f32 %v501_v53, %v438_v21 }
 0x102   :  { %v456_v32 = vadd.f32 %v501_v53, %v433_v24  ;;  %v464_v33 = vadd.f32 %v501_v53, %v441_v25 }
 0x103   :  { %v454_v36 = vadd.f32 %v501_v53, %v431_v28  ;;  %v462_v40 = vadd.f32 %v501_v53, %v439_v29 }
 0x104   :  { %v468_v41 = vpack.c.bf16 %v456_v32, %v455_v30  ;;  %v472_v42 = vpack.c.bf16 %v464_v33, %v463_v31 }
 0x105   :  { %v467_v38 = vpack.c.bf16 %v454_v36, %v453_v34  ;;  %v471_v43 = vpack.c.bf16 %v462_v40, %v461_v35 }
 0x106   :  { %476 = vst [vmem:[%s738_s4 + $0x18] sm:$0xff] %v468_v41  ;;  %480 = vst [vmem:[%s738_s4 + $0x38] sm:$0xff] %v472_v42 }
 0x107   :  { %475 = vst [vmem:[%s738_s4 + $0x10] sm:$0xff] %v467_v38  ;;  %479 = vst [vmem:[%s738_s4 + $0x30] sm:$0xff] %v471_v43 }

// kernel: gclstm_conv.3
= control target key start
LH: loop header
LB: loop body
LE: loop exit
PB: predicated region body
PF: predicated region fallthrough
CT: control target
= control target key end

     0   :  { %v585_v1 = vmov 0   ;;  %s761_s1 = inlined_call_operand.vmem [shape: bf16[128,128], index: 1, kind: input, shape index: {}]   ;;  %s762_s0 = inlined_call_operand.vmem [shape: bf16[128,128], index: 0, kind: input, shape index: {}]   ;;  %s763_s3 = inlined_call_operand.vmem [shape: f32[128,1], index: 3, kind: input, shape index: {}]   ;;  %s764_s2 = inlined_call_operand.vmem [shape: f32[1,128], index: 2, kind: input, shape index: {}]   ;;  %s765_s4 = inlined_call_operand.vmem [shape: f32[128,128], index: 4, kind: output, shape index: {}]  }
   0x1   :  { %v569_v0 = vld [vmem:[%s761_s1] sm:$0xff]   ;;  %568 = vset.pattern.permute.xlu1 %v585_v1  ;;  %567 = vset.pattern.permute.xlu0 %v585_v1  ;;  %v570_v2 = vld [vmem:[%s761_s1 + $0x8] sm:$0xff]   ;;  %v571_v3 = vld [vmem:[%s761_s1 + $0x10] sm:$0xff]  }
   0x2   :  { %518 = vmatprep.subr.bf16.mxu0 %v569_v0  ;;  %550 = vmatprep.subr.bf16.mxu1 %v569_v0  ;;  %v572_v4 = vld [vmem:[%s761_s1 + $0x18] sm:$0xff]   ;;  %v577_v5 = vld [vmem:[%s762_s0] sm:$0xff]   ;;  %v574_v8 = vld [vmem:[%s761_s1 + $0x28] sm:$0xff]  }
   0x3   :  { %519 = vmatpush3.bf16.msra.mxu0 %v569_v0  ;;  %558 = vmatpush3.bf16.msra.mxu1 %v569_v0  ;;  %v578_v6 = vld [vmem:[%s762_s0 + $0x20] sm:$0xff]   ;;  %v316_v9 = vld [vmem:[%s763_s3 + $0x10] sm:$0xff]  ;;  %v317_v11 = vld [vmem:[%s763_s3 + $0x18] sm:$0xff] }
   0x4   :  { %520 = vmatprep.subr.bf16.mxu0 %v570_v2  ;;  %551 = vmatprep.subr.bf16.mxu1 %v570_v2  ;;  %v573_v7 = vld [vmem:[%s761_s1 + $0x20] sm:$0xff]   ;;  %v315_v12 = vld [vmem:[%s763_s3 + $0x8] sm:$0xff]  ;;  %v575_v13 = vld [vmem:[%s761_s1 + $0x30] sm:$0xff]  }
   0x5   :  { %534 = vmatprep.mubr.bf16.mxu0 %v577_v5  ;;  %542 = vmatprep.mubr.bf16.mxu1 %v578_v6  ;;  %v314_v10 = vld [vmem:[%s763_s3] sm:$0xff]  ;;  %v319_v14 = vld [vmem:[%s763_s3 + $0x28] sm:$0xff]  ;;  %v576_v16 = vld [vmem:[%s761_s1 + $0x38] sm:$0xff]  }
   0x6   :  { %358 = vperm.xlu1 %568, %v316_v9   ;;  %348 = vperm.xlu0 %567, %v314_v10   ;;  %v318_v15 = vld [vmem:[%s763_s3 + $0x20] sm:$0xff]  ;;  %v321_v17 = vld [vmem:[%s763_s3 + $0x38] sm:$0xff]  ;;  %v320_v18 = vld [vmem:[%s763_s3 + $0x30] sm:$0xff] }
   0x7   :  { %521 = vmatpush3.bf16.msra.mxu0 %v570_v2  ;;  %559 = vmatpush3.bf16.msra.mxu1 %v570_v2  ;;  %v579_v19 = vld [vmem:[%s762_s0 + $0x8] sm:$0xff]   ;;  %v322_v22 = vld [vmem:[%s763_s3 + $0x40] sm:$0xff]  ;;  %v581_v23 = vld [vmem:[%s762_s0 + $0x10] sm:$0xff]  }
   0x8   :  { %522 = vmatprep.subr.bf16.mxu0 %v571_v3  ;;  %552 = vmatprep.subr.bf16.mxu1 %v571_v3  ;;  %v580_v20 = vld [vmem:[%s762_s0 + $0x28] sm:$0xff]   ;;  %v582_v24 = vld [vmem:[%s762_s0 + $0x30] sm:$0xff]   ;;  %v325_v25 = vld [vmem:[%s763_s3 + $0x58] sm:$0xff] }
   0x9   :  { %v323_v21 = vld [vmem:[%s763_s3 + $0x48] sm:$0xff]  ;;  %v324_v26 = vld [vmem:[%s763_s3 + $0x50] sm:$0xff]  ;;  %v583_v27 = vld [vmem:[%s762_s0 + $0x18] sm:$0xff]  }
   0xa   :  { %363 = vperm.xlu1 %568, %v317_v11   ;;  %353 = vperm.xlu0 %567, %v315_v12   ;;  %v584_v28 = vld [vmem:[%s762_s0 + $0x38] sm:$0xff]   ;;  %v327_v29 = vld [vmem:[%s763_s3 + $0x68] sm:$0xff]  ;;  %v326_v30 = vld [vmem:[%s763_s3 + $0x60] sm:$0xff] }
   0xb   :  { %523 = vmatpush3.bf16.msra.mxu0 %v571_v3  ;;  %560 = vmatpush3.bf16.msra.mxu1 %v571_v3  ;;  %v329_v31 = vld [vmem:[%s763_s3 + $0x78] sm:$0xff]  ;;  %v328_v32 = vld [vmem:[%s763_s3 + $0x70] sm:$0xff]  ;;  %v501_v48 = vld [vmem:[%s764_s2] ss:$0 sm:$0xff] }
   0xc   :  { %524 = vmatprep.subr.bf16.mxu0 %v572_v4  ;;  %553 = vmatprep.subr.bf16.mxu1 %v572_v4 }
   0xe   :  { %373 = vperm.xlu1 %568, %v319_v14   ;;  %368 = vperm.xlu0 %567, %v318_v15  }
   0xf   :  { %525 = vmatpush3.bf16.msra.mxu0 %v572_v4  ;;  %561 = vmatpush3.bf16.msra.mxu1 %v572_v4 }
  0x10   :  { %526 = vmatprep.subr.bf16.mxu0 %v573_v7  ;;  %554 = vmatprep.subr.bf16.mxu1 %v573_v7 }
  0x12   :  { %383 = vperm.xlu1 %568, %v321_v17   ;;  %378 = vperm.xlu0 %567, %v320_v18  }
  0x13   :  { %527 = vmatpush3.bf16.msra.mxu0 %v573_v7  ;;  %562 = vmatpush3.bf16.msra.mxu1 %v573_v7 }
  0x14   :  { %528 = vmatprep.subr.bf16.mxu0 %v574_v8  ;;  %555 = vmatprep.subr.bf16.mxu1 %v574_v8 }
  0x16   :  { %393 = vperm.xlu1 %568, %v323_v21   ;;  %388 = vperm.xlu0 %567, %v322_v22  }
  0x17   :  { %529 = vmatpush3.bf16.msra.mxu0 %v574_v8  ;;  %563 = vmatpush3.bf16.msra.mxu1 %v574_v8 }
  0x18   :  { %530 = vmatprep.subr.bf16.mxu0 %v575_v13  ;;  %556 = vmatprep.subr.bf16.mxu1 %v575_v13 }
  0x1a   :  { %403 = vperm.xlu1 %568, %v325_v25   ;;  %398 = vperm.xlu0 %567, %v324_v26  }
  0x1b   :  { %531 = vmatpush3.bf16.msra.mxu0 %v575_v13  ;;  %564 = vmatpush3.bf16.msra.mxu1 %v575_v13 }
  0x1c   :  { %532 = vmatprep.subr.bf16.mxu0 %v576_v16  ;;  %557 = vmatprep.subr.bf16.mxu1 %v576_v16 }
  0x1e   :  { %413 = vperm.xlu1 %568, %v327_v29   ;;  %408 = vperm.xlu0 %567, %v326_v30  }
  0x1f   :  { %533 = vmatpush3.bf16.msra.mxu0 %v576_v16  ;;  %565 = vmatpush3.bf16.msra.mxu1 %v576_v16 }
  0x22   :  { %535 = vmatmul.mubr.bf16.vlgmr.msra.gmra.mrb[0].mxu0 %v579_v19  ;;  %543 = vmatmul.mubr.bf16.vlgmr.msra.gmra.mrb[0].mxu1 %v580_v20 }
  0x23   :  { %538 = vmatprep.mubr.bf16.mxu0 %v581_v23  ;;  %546 = vmatprep.mubr.bf16.mxu1 %v582_v24 }
  0x24   :  { %423 = vperm.xlu1 %568, %v329_v31   ;;  %418 = vperm.xlu0 %567, %v328_v32  }
  0x2a   :  { %539 = vmatmul.mubr.bf16.gmra.mrb[4].mxu0 %v583_v27  ;;  %547 = vmatmul.mubr.bf16.gmra.mrb[4].mxu1 %v584_v28 }
  0x85   :  { %v359_v33 = vpop.permute.xlu1 %358  ;;  %v349_v34 = vpop.permute.xlu0 %348 }
  0x89   :  { %v364_v35 = vpop.permute.xlu1 %363  ;;  %v354_v36 = vpop.permute.xlu0 %353 }
  0x8d   :  { %v707_v37 = vpop.permute.xlu1 %373  ;;  %v369_v38 = vpop.permute.xlu0 %368 }
  0x91   :  { %v384_v39 = vpop.permute.xlu1 %383  ;;  %v379_v40 = vpop.permute.xlu0 %378 }
  0x95   :  { %v394_v41 = vpop.permute.xlu1 %393  ;;  %v389_v42 = vpop.permute.xlu0 %388 }
  0x99   :  { %v404_v43 = vpop.permute.xlu1 %403  ;;  %v399_v44 = vpop.permute.xlu0 %398 }
  0x9d   :  { %v414_v45 = vpop.permute.xlu1 %413  ;;  %v409_v46 = vpop.permute.xlu0 %408 }
  0xa3   :  { %v424_v8 = vpop.permute.xlu1 %423  ;;  %v419_v9 = vpop.permute.xlu0 %418 }
  0xf5   :  { %v536_v47 = vpop.f32.mrb[0].mxu0  ;;  %v544_v49 = vpop.f32.mrb[0].mxu1 }
  0xf6   :  { %v428_v50 = vmul.f32 %v536_v47, %v359_v33  ;;  %v436_v51 = vmul.f32 %v544_v49, %v399_v44  ;;  %v216_v52 = vpop.f32.mrb[1].mxu0  ;;  %v248_v53 = vpop.f32.mrb[1].mxu1 }
  0xf7   :  { %v426_v54 = vmul.f32 %v349_v34, %v216_v52  ;;  %v434_v55 = vmul.f32 %v389_v42, %v248_v53  ;;  %v537_v56 = vpop.f32.mrb[2].mxu0  ;;  %v545_v57 = vpop.f32.mrb[2].mxu1 }
  0xf8   :  { %v451_v58 = vadd.f32 %v501_v48, %v428_v50  ;;  %v459_v59 = vadd.f32 %v501_v48, %v436_v51  ;;  %v429_v60 = vmul.f32 %v537_v56, %v364_v35  ;;  %v437_v61 = vmul.f32 %v545_v57, %v404_v43  ;;  %v219_v62 = vpop.f32.mrb[3].mxu0  ;;  %v251_v63 = vpop.f32.mrb[3].mxu1 }
  0xf9   :  { %v449_v0 = vadd.f32 %v501_v48, %v426_v54  ;;  %v457_v1 = vadd.f32 %v501_v48, %v434_v55  ;;  %v427_v2 = vmul.f32 %v354_v36, %v219_v62  ;;  %v435_v3 = vmul.f32 %v394_v41, %v251_v63 }
  0xfa   :  { %467 = vst [vmem:[%s765_s4 + $0x10] sm:$0xff] %v451_v58  ;;  %475 = vst [vmem:[%s765_s4 + $0x50] sm:$0xff] %v459_v59  ;;  %v452_v4 = vadd.f32 %v501_v48, %v429_v60  ;;  %v460_v5 = vadd.f32 %v501_v48, %v437_v61 }
  0xfb   :  { %465 = vst [vmem:[%s765_s4] sm:$0xff] %v449_v0  ;;  %473 = vst [vmem:[%s765_s4 + $0x40] sm:$0xff] %v457_v1  ;;  %v450_v6 = vadd.f32 %v501_v48, %v427_v2  ;;  %v458_v7 = vadd.f32 %v501_v48, %v435_v3 }
  0xfc   :  { %468 = vst [vmem:[%s765_s4 + $0x18] sm:$0xff] %v452_v4  ;;  %476 = vst [vmem:[%s765_s4 + $0x58] sm:$0xff] %v460_v5 }
  0xfd   :  { %466 = vst [vmem:[%s765_s4 + $0x8] sm:$0xff] %v450_v6  ;;  %474 = vst [vmem:[%s765_s4 + $0x48] sm:$0xff] %v458_v7  ;;  %v540_v10 = vpop.f32.mrb[4].mxu0  ;;  %v548_v11 = vpop.f32.mrb[4].mxu1 }
  0xfe   :  { %v432_v12 = vmul.f32 %v540_v10, %v379_v40  ;;  %v440_v13 = vmul.f32 %v548_v11, %v419_v9  ;;  %v232_v14 = vpop.f32.mrb[5].mxu0  ;;  %v264_v15 = vpop.f32.mrb[5].mxu1 }
  0xff   :  { %v430_v16 = vmul.f32 %v369_v38, %v232_v14  ;;  %v438_v17 = vmul.f32 %v409_v46, %v264_v15  ;;  %v541_v18 = vpop.f32.mrb[6].mxu0  ;;  %v549_v19 = vpop.f32.mrb[6].mxu1 }
 0x100   :  { %v455_v20 = vadd.f32 %v501_v48, %v432_v12  ;;  %v463_v21 = vadd.f32 %v501_v48, %v440_v13  ;;  %v433_v22 = vmul.f32 %v541_v18, %v384_v39  ;;  %v441_v23 = vmul.f32 %v549_v19, %v424_v8  ;;  %v235_v24 = vpop.f32.mrb[7].mxu0  ;;  %v267_v25 = vpop.f32.mrb[7].mxu1 }
 0x101   :  { %v453_v26 = vadd.f32 %v501_v48, %v430_v16  ;;  %v461_v27 = vadd.f32 %v501_v48, %v438_v17  ;;  %v431_v28 = vmul.f32 %v707_v37, %v235_v24  ;;  %v439_v29 = vmul.f32 %v414_v45, %v267_v25 }
 0x102   :  { %471 = vst [vmem:[%s765_s4 + $0x30] sm:$0xff] %v455_v20  ;;  %479 = vst [vmem:[%s765_s4 + $0x70] sm:$0xff] %v463_v21  ;;  %v456_v30 = vadd.f32 %v501_v48, %v433_v22  ;;  %v464_v31 = vadd.f32 %v501_v48, %v441_v23 }
 0x103   :  { %469 = vst [vmem:[%s765_s4 + $0x20] sm:$0xff] %v453_v26  ;;  %477 = vst [vmem:[%s765_s4 + $0x60] sm:$0xff] %v461_v27  ;;  %v454_v32 = vadd.f32 %v501_v48, %v431_v28  ;;  %v462_v33 = vadd.f32 %v501_v48, %v439_v29 }
 0x104   :  { %472 = vst [vmem:[%s765_s4 + $0x38] sm:$0xff] %v456_v30  ;;  %480 = vst [vmem:[%s765_s4 + $0x78] sm:$0xff] %v464_v31 }
 0x105   :  { %470 = vst [vmem:[%s765_s4 + $0x28] sm:$0xff] %v454_v32  ;;  %478 = vst [vmem:[%s765_s4 + $0x68] sm:$0xff] %v462_v33 }

</bundles_post_ra>
